<compile_context>
chip_gen: v7x
topology: tpu7x:2x2x1
jax: 0.10.0
libtpu: 0.0.40
codegen_flags: <defaults>
</compile_context>

<pallas_src>
import functools

import jax
import jax.numpy as jnp
from jax.experimental import pallas as pl
from jax.experimental.pallas import tpu as pltpu

INPUT_DIM = 28 * 28          # 784
HIDDEN_DIM = 100             # logical hidden width (torch model)
OUTPUT_DIM = 10              # logical output width (torch model)
HIDDEN_PAD = 128             # lane-dense padded hidden width (keep 128, see review)
OUTPUT_PAD = 128             # lane-dense padded output width


def _round_up(x, m):
    return (x + m - 1) // m * m


def _mlp_kernel(x_ref, w1_ref, b1_ref, w2_ref, b2_ref, o_ref):
    # In-kernel f32 -> bf16 cast of the streamed x tile (no separate HBM pass).
    x = x_ref[...].astype(jnp.bfloat16)
    # fc1: [TB, 784]bf16 @ [784, 128]bf16 -> f32 accum, + bias, ReLU (fused epilogue)
    h = jnp.dot(x, w1_ref[...], preferred_element_type=jnp.float32)
    h = jnp.maximum(h + b1_ref[...], 0.0)
    # fc2: [TB, 128]bf16 @ [128, 128]bf16 -> f32 accum, + bias
    out = jnp.dot(h.astype(jnp.bfloat16), w2_ref[...],
                  preferred_element_type=jnp.float32)
    o_ref[...] = (out + b2_ref[...]).astype(o_ref.dtype)


@functools.partial(jax.jit,
                   static_argnames=("block_b", "out_dtype", "return_padded"))
def mlp_forward(x, w1, b1, w2, b2, *, block_b=1024,
                out_dtype=jnp.float32, return_padded=False):
    """x: [B, 784] f32.  w1: [784, 128] bf16, b1: [1, 128] f32,
    w2: [128, 128] bf16, b2: [1, 128] f32 (zero-padded beyond 100/10).

    Default: returns [B, 10] f32, same semantics as torch fc1 -> ReLU -> fc2.
    With return_padded=True returns the raw [ceil-padded rows, 128] kernel
    output (columns >= 10 are zero, rows >= B are garbage) so downstream ops
    can be fused without an extra slice pass; out_dtype=jnp.bfloat16 halves
    writeback for consumers that can take it.
    """
    B = x.shape[0]
    # Batch tile: multiple of 8 sublanes, capped at ceil(B/2) so the grid has
    # >= 2 steps whenever possible (v7x megacore), and at block_b so the
    # double-buffered f32 x tile stays well inside scoped VMEM.
    TB = max(8, min(block_b, _round_up(pl.cdiv(B, 2), 8)))
    grid_b = pl.cdiv(B, TB)          # partial last block handled by Pallas; no jnp.pad
    B_out = grid_b * TB

    flops = 2 * B_out * (INPUT_DIM * HIDDEN_PAD + HIDDEN_PAD * OUTPUT_PAD)
    bytes_accessed = (
        B * INPUT_DIM * 4                           # x read (f32, cast in-kernel)
        + INPUT_DIM * HIDDEN_PAD * 2                # w1 (bf16, resident)
        + HIDDEN_PAD * OUTPUT_PAD * 2               # w2 (bf16, resident)
        + (HIDDEN_PAD + OUTPUT_PAD) * 4             # biases (f32)
        + B_out * OUTPUT_PAD * jnp.dtype(out_dtype).itemsize   # out writeback
    )

    out_pad = pl.pallas_call(
        _mlp_kernel,
        out_shape=jax.ShapeDtypeStruct((B_out, OUTPUT_PAD), out_dtype),
        grid=(grid_b,),
        in_specs=[
            pl.BlockSpec((TB, INPUT_DIM), lambda i: (i, 0)),          # x tile (streamed)
            pl.BlockSpec((INPUT_DIM, HIDDEN_PAD), lambda i: (0, 0)),  # w1 resident
            pl.BlockSpec((1, HIDDEN_PAD), lambda i: (0, 0)),          # b1 resident
            pl.BlockSpec((HIDDEN_PAD, OUTPUT_PAD), lambda i: (0, 0)), # w2 resident
            pl.BlockSpec((1, OUTPUT_PAD), lambda i: (0, 0)),          # b2 resident
        ],
        out_specs=pl.BlockSpec((TB, OUTPUT_PAD), lambda i: (i, 0)),
        compiler_params=pltpu.CompilerParams(
            dimension_semantics=("parallel",),
            vmem_limit_bytes=32 * 1024 * 1024,      # headroom above v5e's 16 MiB default
        ),
        cost_estimate=pl.CostEstimate(
            flops=flops, transcendentals=0, bytes_accessed=bytes_accessed),
    )(x, w1, b1, w2, b2)

    if return_padded:
        return out_pad
    # Strip batch tail (rows >= B) and the lane padding (cols 10..127 are 0).
    return out_pad[:B, :OUTPUT_DIM]


def init_params(key):
    """Deterministic init mimicking nn.Linear: U(-1/sqrt(fan_in), 1/sqrt(fan_in)).
    Returns TPU-friendly padded/transposed params:
      w1 [784, 128] bf16, b1 [1, 128] f32, w2 [128, 128] bf16, b2 [1, 128] f32,
    where columns/rows beyond the logical 100/10 are zero, plus the logical
    f32 params for the reference computation."""
    k1, k2, k3, k4 = jax.random.split(key, 4)
    bound1 = 1.0 / jnp.sqrt(jnp.float32(INPUT_DIM))
    bound2 = 1.0 / jnp.sqrt(jnp.float32(HIDDEN_DIM))
    # Logical params stored as [in, out] (transposed relative to torch's [out, in]).
    w1 = jax.random.uniform(k1, (INPUT_DIM, HIDDEN_DIM), jnp.float32, -bound1, bound1)
    b1 = jax.random.uniform(k2, (1, HIDDEN_DIM), jnp.float32, -bound1, bound1)
    w2 = jax.random.uniform(k3, (HIDDEN_DIM, OUTPUT_DIM), jnp.float32, -bound2, bound2)
    b2 = jax.random.uniform(k4, (1, OUTPUT_DIM), jnp.float32, -bound2, bound2)

    # Zero-pad to lane-dense widths; pads contribute exactly 0 to the math
    # (b1 pad = 0 -> ReLU(0) = 0; w2 pad rows = 0).
    w1_p = jnp.zeros((INPUT_DIM, HIDDEN_PAD), jnp.float32).at[:, :HIDDEN_DIM].set(w1)
    b1_p = jnp.zeros((1, HIDDEN_PAD), jnp.float32).at[:, :HIDDEN_DIM].set(b1)
    w2_p = jnp.zeros((HIDDEN_PAD, OUTPUT_PAD), jnp.float32)
    w2_p = w2_p.at[:HIDDEN_DIM, :OUTPUT_DIM].set(w2)
    b2_p = jnp.zeros((1, OUTPUT_PAD), jnp.float32).at[:, :OUTPUT_DIM].set(b2)

    padded = (w1_p.astype(jnp.bfloat16), b1_p, w2_p.astype(jnp.bfloat16), b2_p)
    logical = (w1, b1, w2, b2)
    return padded, logical


if __name__ == "__main__":
    key = jax.random.PRNGKey(0)
    kx, kp = jax.random.split(key)
    (w1p, b1p, w2p, b2p), (w1, b1, w2, b2) = init_params(kp)

    # Tolerance loosened vs the f32 reference because the kernel runs the MXU
    # in bf16 with f32 accumulation.
    def check(batch):
        x = jax.random.normal(kx, (batch, INPUT_DIM), jnp.float32)
        out = jax.block_until_ready(mlp_forward(x, w1p, b1p, w2p, b2p))
        ref = jnp.maximum(x @ w1 + b1, 0.0) @ w2 + b2
        assert out.shape == (batch, OUTPUT_DIM), out.shape
        assert jnp.allclose(out, ref, atol=3e-2, rtol=3e-2), (
            float(jnp.max(jnp.abs(out - ref))))

    check(16)   # even split: 2 grid steps of TB=8
    check(13)   # ragged batch: partial last block, no wrapper-side padding pass
    print("KERNEL_OK")
</pallas_src>

<mosaic_0001>
module attributes {stable_mosaic.version = 11 : i64} {
  func.func @_mlp_kernel(%arg0: i32, %arg1: memref<8x784xf32, #tpu.memory_space<vmem>>, %arg2: memref<784x128xbf16, #tpu.memory_space<vmem>>, %arg3: memref<1x128xf32, #tpu.memory_space<vmem>>, %arg4: memref<128x128xbf16, #tpu.memory_space<vmem>>, %arg5: memref<1x128xf32, #tpu.memory_space<vmem>>, %arg6: memref<8x128xf32, #tpu.memory_space<vmem>>) attributes {dimension_semantics = [#tpu.dimension_semantics<parallel>], iteration_bounds = array<i64: 2>, scalar_prefetch = 0 : i64, scratch_operands = 0 : i64, tpu.core_type = #tpu.core_type<tc>, window_params = [{transform_indices = @transform_0, window_bounds = array<i64: 8, 784>}, {pipeline_mode = #tpu.pipeline_mode<synchronous>, transform_indices = @transform_1, window_bounds = array<i64: 784, 128>}, {pipeline_mode = #tpu.pipeline_mode<synchronous>, transform_indices = @transform_2, window_bounds = array<i64: 1, 128>}, {pipeline_mode = #tpu.pipeline_mode<synchronous>, transform_indices = @transform_3, window_bounds = array<i64: 128, 128>}, {pipeline_mode = #tpu.pipeline_mode<synchronous>, transform_indices = @transform_4, window_bounds = array<i64: 1, 128>}, {transform_indices = @transform_5, window_bounds = array<i64: 8, 128>}]} {
    %c0 = arith.constant 0 : index
    %c0_0 = arith.constant 0 : index
    %0 = vector.load %arg1[%c0, %c0_0] : memref<8x784xf32, #tpu.memory_space<vmem>>, vector<8x784xf32>
    %1 = arith.truncf %0 : vector<8x784xf32> to vector<8x784xbf16>
    %c0_1 = arith.constant 0 : index
    %c0_2 = arith.constant 0 : index
    %2 = vector.load %arg2[%c0_1, %c0_2] : memref<784x128xbf16, #tpu.memory_space<vmem>>, vector<784x128xbf16>
    %cst = arith.constant dense<0.000000e+00> : vector<8x128xf32>
    %3 = tpu.matmul %1, %2, %cst {dimension_numbers = #tpu.dot_dimension_numbers<[1], [0], [0], [1], [0, 0, 1, 1], [], []>} : vector<8x784xbf16>, vector<784x128xbf16>, vector<8x128xf32> -> vector<8x128xf32>
    %c0_3 = arith.constant 0 : index
    %c0_4 = arith.constant 0 : index
    %4 = vector.load %arg3[%c0_3, %c0_4] : memref<1x128xf32, #tpu.memory_space<vmem>>, vector<1x128xf32>
    %5 = vector.broadcast %4 : vector<1x128xf32> to vector<8x128xf32>
    %6 = arith.addf %3, %5 : vector<8x128xf32>
    %cst_5 = arith.constant 0.000000e+00 : f32
    %7 = vector.broadcast %cst_5 : f32 to vector<8x128xf32>
    %8 = arith.maximumf %6, %7 : vector<8x128xf32>
    %9 = arith.truncf %8 : vector<8x128xf32> to vector<8x128xbf16>
    %c0_6 = arith.constant 0 : index
    %c0_7 = arith.constant 0 : index
    %10 = vector.load %arg4[%c0_6, %c0_7] : memref<128x128xbf16, #tpu.memory_space<vmem>>, vector<128x128xbf16>
    %cst_8 = arith.constant dense<0.000000e+00> : vector<8x128xf32>
    %11 = tpu.matmul %9, %10, %cst_8 {dimension_numbers = #tpu.dot_dimension_numbers<[1], [0], [0], [1], [0, 0, 1, 1], [], []>} : vector<8x128xbf16>, vector<128x128xbf16>, vector<8x128xf32> -> vector<8x128xf32>
    %c0_9 = arith.constant 0 : index
    %c0_10 = arith.constant 0 : index
    %12 = vector.load %arg5[%c0_9, %c0_10] : memref<1x128xf32, #tpu.memory_space<vmem>>, vector<1x128xf32>
    %13 = vector.broadcast %12 : vector<1x128xf32> to vector<8x128xf32>
    %14 = arith.addf %11, %13 : vector<8x128xf32>
    %c0_11 = arith.constant 0 : index
    %c0_12 = arith.constant 0 : index
    %15 = vector.load %arg6[%c0_11, %c0_12] : memref<8x128xf32, #tpu.memory_space<vmem>>, vector<8x128xf32>
    tpu.vector_store %arg6[%c0_11, %c0_12], %14 {strides = array<i32>} : memref<8x128xf32, #tpu.memory_space<vmem>>, vector<8x128xf32>,
    return
  }
  func.func @transform_0(%arg0: i32) -> (i32, i32) {
    %c0_i32 = arith.constant 0 : i32
    %c0_i32_0 = arith.constant 0 : i32
    return %arg0, %c0_i32 : i32, i32
  }
  func.func @transform_1(%arg0: i32) -> (i32, i32) {
    %c0_i32 = arith.constant 0 : i32
    %c0_i32_0 = arith.constant 0 : i32
    %c0_i32_1 = arith.constant 0 : i32
    return %c0_i32, %c0_i32_0 : i32, i32
  }
  func.func @transform_2(%arg0: i32) -> (i32, i32) {
    %c0_i32 = arith.constant 0 : i32
    %c0_i32_0 = arith.constant 0 : i32
    %c0_i32_1 = arith.constant 0 : i32
    return %c0_i32, %c0_i32_0 : i32, i32
  }
  func.func @transform_3(%arg0: i32) -> (i32, i32) {
    %c0_i32 = arith.constant 0 : i32
    %c0_i32_0 = arith.constant 0 : i32
    %c0_i32_1 = arith.constant 0 : i32
    return %c0_i32, %c0_i32_0 : i32, i32
  }
  func.func @transform_4(%arg0: i32) -> (i32, i32) {
    %c0_i32 = arith.constant 0 : i32
    %c0_i32_0 = arith.constant 0 : i32
    %c0_i32_1 = arith.constant 0 : i32
    return %c0_i32, %c0_i32_0 : i32, i32
  }
  func.func @transform_5(%arg0: i32) -> (i32, i32) {
    %c0_i32 = arith.constant 0 : i32
    %c0_i32_0 = arith.constant 0 : i32
    return %arg0, %c0_i32 : i32, i32
  }
}

</mosaic_0001>

<bundles_post_ra>
// kernel: mlp_forward.1
= control target key start
LH: loop header
LB: loop body
LE: loop exit
PB: predicated region body
PF: predicated region fallthrough
CT: control target
= control target key end

     0   :  { %10 = vsyncpa [#allocation3], 0  ;;  %s1827_s0 = inlined_call_operand.hbm [shape: f32[16,784], index: 0, kind: input, shape index: {}]   ;;  %s1828_s1 = inlined_call_operand.hbm [shape: bf16[784,128], index: 1, kind: input, shape index: {}]   ;;  %s1829_s2 = inlined_call_operand.vmem [shape: f32[1,128], index: 2, kind: input, shape index: {}]   ;;  %s1830_s3 = inlined_call_operand.hbm [shape: bf16[128,128], index: 3, kind: input, shape index: {}]   ;;  %s1831_s4 = inlined_call_operand.vmem [shape: f32[1,128], index: 4, kind: input, shape index: {}]   ;;  %s1832_s5 = inlined_call_operand.hbm [shape: f32[16,128], index: 5, kind: output, shape index: {}]  }
   0x1   :  { %12 = vsyncpa [#allocation3 + $0x1], 0 }
   0x2   :  { %13 = vsyncpa [#allocation6], 0 }
   0x3   :  { %14 = vsyncpa [#allocation4], 0 }
   0x4   :  { %16 = vsyncpa [#allocation4 + $0x1], 0  ;;  %s1569_s18 = smov 0   ;;  %s1571_s19 = smov 0  }
   0x5   :  { %s1573_s20 = smov 0   ;;  %s1575_s21 = smov 0  }
   0x6 LB: > { %s1590_s22 = sadd.s32 4294967295, %s1529_s21   ;;  %s1065_s23 = sadd.s32 4294967294, %s1529_s21   ;;  %s1529_s21 = sphi %s1575_s21, %s1852_s21   ;;  %s1525_s20 = sphi %s1573_s20, %s1851_s20   ;;  %s1521_s19 = sphi %s1571_s19, %s1850_s19   ;;  %s1517_s18 = sphi %s1569_s18, %s1849_s18  }
   0x7   : > { %p42_p0 = scmp.ne.s32.totalorder %s1521_s19, %s1517_s18  ;;  %p1833_p1 = scmp.eq.s32.totalorder %s1590_s22, 0 }
   0x8   : > { %p156_p3 = scmp.eq.s32.totalorder %s1065_s23, 1  ;;  %p1066_p5 = scmp.ge.s32.totalorder %s1529_s21, 1 }
   0x9   : > { %p1599_p4 = por %p1833_p1, %p42_p0  ;;  %p163_p7 = scmp.lt.s32.totalorder %s1529_s21, 3 }
   0xa   : > { %p1604_p6 = por %p156_p3, %p42_p0  ;;  %s1531_s27 = smov [#allocation5]  }
   0xb   : > { %s1836_s24 = scalar_select %p1599_p4, 1, 0 }
   0xc   : > { %s1837_s25 = scalar_select %p1604_p6, 1, 0 }
   0xd   : > { %p1609_p8 = pnand %p1066_p5, %p163_p7  ;;  %s175_s28 = sshll.u32 %s1531_s27, 4  ;;  %s1613_s28 = int_to_ptr.vmem [resolvable:$true] %s175_s28 }
   0xe   : > { %s1532_s30 = smov [#allocation7]   ;;  %s1373_s9 = scalar_lea.hbm %s1828_s1, 6272 }
   0xf   : > { %p1257_p9 = pneg %p1609_p8  ;;  %s191_s6 = sshll.u32 %s1532_s30, 4  ;;  %s1624_s6 = int_to_ptr.vmem [resolvable:$true] %s191_s6 }
  0x10   : > { %p1374_p12 = scmp.ne.s32.totalorder %s1828_s1, %s1373_s9  ;;  %p1380_p5 = scmp.lt.u32.totalorder %s1373_s9, %s1828_s1 }
  0x11   : > { %p1620_p11 = pnand %p1257_p9, %p1833_p1 }
  0x13   : > { %p1375_p13 = pneg %p1620_p11 }
  0x15   : > { %p1376_p0 = pnand %p1375_p13, %p1374_p12 }
  0x17   : > { %p1377_p3 = pneg %p1376_p0 }
  0x19   : > { %p1382_p7 = pnand %p1380_p5, %p1377_p3 }
  0x1b   : > { %1385 = shalt.err (!%p1382_p7)
}
  0x1c   : > { %s1386_s14 = scalar_lea.vmem %s1613_s28, 6272  ;;  %p1394_p2 = scmp.lt.s32.totalorder %s1613_s28, %s1613_s28 }
  0x1d   : > { %p1387_p9 = scmp.ne.s32.totalorder %s1613_s28, %s1386_s14  ;;  %p1395_p12 = scmp.lt.s32.totalorder %s1386_s14, %s1386_s14 }
  0x1f   : > { %p1389_p10 = pnand %p1387_p9, %p1375_p13  ;;  %p1396_p0 = por %p1395_p12, %p1394_p2 }
  0x21   : > { %p1390_p1 = pneg %p1389_p10 }
  0x23   : > { %p1397_p6 = pnand %p1396_p0, %p1390_p1 }
  0x25   : > { %1400 = shalt.err (!%p1397_p6)
}
  0x26   : > { %s1533_s15 = smov 64   ;;  %s1534_s16 = smov 4  }
  0x27   : > { %1260 = dma.hbm_to_vmem [thread:$0]  (!%p1620_p11), %s1828_s1, 6272, %s1613_s28, [#allocation6], %s1533_s15, %s1533_s15, %s1534_s16  }
  0x28   : > { %s1401_s7 = scalar_lea.hbm %s1830_s3, 1024 }
  0x29   : > { %p1402_p2 = scmp.ne.s32.totalorder %s1830_s3, %s1401_s7  ;;  %p1408_p10 = scmp.lt.u32.totalorder %s1401_s7, %s1830_s3 }
  0x2b   : > { %p1404_p1 = pnand %p1402_p2, %p1375_p13 }
  0x2d   : > { %p1405_p6 = pneg %p1404_p1 }
  0x2f   : > { %p1410_p3 = pnand %p1408_p10, %p1405_p6 }
  0x31   : > { %1413 = shalt.err (!%p1410_p3)
}
  0x32   : > { %s1414_s28 = scalar_lea.vmem %s1624_s6, 1024  ;;  %p1422_p12 = scmp.lt.s32.totalorder %s1624_s6, %s1624_s6 }
  0x33   : > { %p1415_p5 = scmp.ne.s32.totalorder %s1624_s6, %s1414_s28  ;;  %p1423_p0 = scmp.lt.s32.totalorder %s1414_s28, %s1414_s28 }
  0x35   : > { %p1417_p7 = pnand %p1415_p5, %p1375_p13  ;;  %p1424_p2 = por %p1423_p0, %p1422_p12 }
  0x37   : > { %p1418_p9 = pneg %p1417_p7 }
  0x39   : > { %p1425_p1 = pnand %p1424_p2, %p1418_p9 }
  0x3b   : > { %1428 = shalt.err (!%p1425_p1)
}
  0x3c   : > { %1263 = dma.hbm_to_vmem [thread:$0]  (!%p1620_p11), %s1830_s3, 1024, %s1624_s6, [#allocation6], %s1533_s15, %s1533_s15, %s1534_s16  }
  0x3d   : > { %s1679_s14 = sadd.s32 1, %s1529_s21   ;;  %s29_s29 = sadd.s32 1, %s1525_s20 }
  0x3e   : > { %s26_s17 = ssub.s32 %s1529_s21, %s1679_s14  ;;  %p36_p13 = scmp.ne.s32.totalorder %s1525_s20, %s1521_s19 }
  0x3f   : > { %p27_p6 = scmp.eq.s32.totalorder %s26_s17, 0  ;;  %p37_p10 = scmp.eq.s32.totalorder %s1529_s21, 0 }
  0x40   : > { %p1840_p3 = scmp.eq.s32.totalorder %s1590_s22, 1  ;;  %p1274_p7 = scmp.lt.s32.totalorder %s1529_s21, 2 }
  0x41   : > { %s1695_s27 = scalar_select %p27_p6, %s1525_s20, %s29_s29  }
  0x42   : > { %p1689_p5 = por %p1840_p3, %p36_p13  ;;  %p38_p9 = por %p37_p10, %p36_p13 }
  0x43   : > { %s208_s30 = sand.u32 1, %s1525_s20   ;;  %s1243_s6 = smul.u32 896, %s1529_s21 }
  0x44   : > { %s1841_s23 = scalar_select %p1689_p5, 1, 0 }
  0x45   : > { %s1242_s7 = smul.u32 56, %s208_s30  ;;  %p1699_p11 = pnand %p1274_p7, %p38_p9 }
  0x46   : > { %s1706_s9 = scalar_lea.hbm %s1827_s0, %s1243_s6  ;;  %s209_s28 = scalar_lea.sflag [#allocation3], %s208_s30 }
  0x47   : > { %s212_s10 = scalar_lea.vmem [#allocation2], %s1242_s7  ;;  %s1429_s12 = scalar_lea.hbm %s1706_s9, 896 }
  0x48   : > { %s220_s11 = sshll.u32 %s212_s10, 4  ;;  %p1430_p12 = scmp.ne.s32.totalorder %s1706_s9, %s1429_s12  ;;  %s1708_s11 = int_to_ptr.vmem [resolvable:$true] %s220_s11 }
  0x49   : > { %p1431_p0 = pneg %p1699_p11  ;;  %s1434_s17 = scalar_lea.hbm %s1827_s0, 1792 }
  0x4a   : > { %p1435_p13 = scmp.lt.u32.totalorder %s1706_s9, %s1827_s0  ;;  %p1436_p6 = scmp.lt.u32.totalorder %s1434_s17, %s1429_s12 }
  0x4b   : > { %p1432_p2 = pnand %p1431_p0, %p1430_p12  ;;  %p1438_p3 = scmp.lt.u32.totalorder %s1429_s12, %s1706_s9 }
  0x4c   : > { %p1437_p10 = por %p1436_p6, %p1435_p13 }
  0x4d   : > { %p1433_p1 = pneg %p1432_p2 }
  0x4e   : > { %p1439_p7 = por %p1438_p3, %p1437_p10 }
  0x50   : > { %p1440_p9 = pnand %p1439_p7, %p1433_p1 }
  0x52   : > { %1443 = shalt.err (!%p1440_p9)
}
  0x53   : > { %s1444_s30 = scalar_lea.vmem %s1708_s11, 896  ;;  %s1535_s7 = smov [#allocation2]  }
  0x54   : > { %p1445_p12 = scmp.ne.s32.totalorder %s1708_s11, %s1444_s30  ;;  %s1449_s8 = sshll.u32 %s1535_s7, 4  ;;  %s1450_s8 = int_to_ptr.vmem [resolvable:$false] %s1449_s8 }
  0x55   : > { %s1451_s10 = scalar_lea.vmem %s1450_s8, 1792  ;;  %p1452_p4 = scmp.lt.s32.totalorder %s1708_s11, %s1450_s8 }
  0x56   : > { %p1447_p2 = pnand %p1445_p12, %p1431_p0  ;;  %p1453_p13 = scmp.lt.s32.totalorder %s1451_s10, %s1444_s30 }
  0x58   : > { %p1448_p5 = pneg %p1447_p2  ;;  %p1454_p6 = por %p1453_p13, %p1452_p4 }
  0x5a   : > { %p1455_p10 = pnand %p1454_p6, %p1448_p5 }
  0x5c   : > { %1458 = shalt.err (!%p1455_p10)
}
  0x5d   : > { %1267 = dma.hbm_to_vmem [thread:$0]  (!%p1699_p11), %s1706_s9, 896, %s1708_s11, %s209_s28  }
  0x5e   : > { %229 = sbr.rel (%p1609_p8) target bundleno = 621 (0x26d), region = 40  ;;  %s1738_s12 = sand.u32 (!%p1609_p8), 1, %s1521_s19  }
  0x5f   : > { %s1244_s13 = smul.u32 (!%p1609_p8), 56, %s1738_s12  ;;  %s232_s29 = scalar_lea.sflag (!%p1609_p8), [#allocation3], %s1738_s12 }
  0x60   : > { %p1843_p4 = scmp.ne.s32.totalorder (!%p1609_p8), %s1836_s24, 0 }
  0x61   : > { %s1742_s17 = scalar_lea.vmem (!%p1609_p8), [#allocation2], %s1244_s13 }
  0x65   : > { %1504 = dma.done.wait (%p1843_p4), %s232_s29, 896  }
  0x66   : > { %1506 = vsyncadd (%p1843_p4), %s232_s29, 4294966400  ;;  %p1844_p5 = scmp.eq.s32.totalorder %s1590_s22, 0 }
  0x68   : > { %1508 = dma.done.wait (%p1844_p5), [#allocation6], 7296   ;;  %p1845_p8 = pmov %p1844_p5 }
  0x69   : > { %v1316_v0 = vld [vmem:[#allocation5 + $0x40] sm:$0xff]   ;;  %v1320_v4 = vld [vmem:[#allocation5 + $0x48] sm:$0xff]   ;;  %v1324_v8 = vld [vmem:[#allocation5 + $0x50] sm:$0xff]   ;;  %v1536_v44 = vmov 0.0   ;;  %vm1537_vm0 = vmmov 0   ;;  %vm684_vm1 = vcmask 130048  }
  0x6a   : > { %1510 = vsyncadd (%p1845_p8), [#allocation6], 4294960000  ;;  %v1317_v1 = vld [vmem:[#allocation5] sm:$0xff]   ;;  %1139 = vmatprep.subr.bf16.mxu0 %v1316_v0  ;;  %v1321_v5 = vld [vmem:[#allocation5 + $0x8] sm:$0xff]   ;;  %s1074_s15 = sshll.u32 %s1738_s12, 3  ;;  %s1136_s28 = sshll.u32 %s1590_s22, 7 }
  0x6b   : > { %v1318_v2 = vld [vmem:[#allocation5 + $0xc0] sm:$0xff]   ;;  %1140 = vmatpush3.bf16.msra.mxu0 %v1317_v1  ;;  %v1322_v6 = vld [vmem:[#allocation5 + $0xc8] sm:$0xff]   ;;  %v1325_v9 = vld [vmem:[#allocation5 + $0x10] sm:$0xff]   ;;  %s269_s6 = scalar_lea.vmem [#allocation8], %s1074_s15  ;;  %s1783_s8 = scalar_lea.hbm %s1832_s5, %s1136_s28 }
  0x6c   : > { %v1319_v3 = vld [vmem:[#allocation5 + $0x80] sm:$0xff]   ;;  %1161 = vmatprep.subr.bf16.mxu1 %v1318_v2  ;;  %1141 = vmatprep.subr.bf16.mxu0 %v1320_v4  ;;  %v1323_v7 = vld [vmem:[#allocation5 + $0x88] sm:$0xff]   ;;  %v1326_v10 = vld [vmem:[#allocation5 + $0xd0] sm:$0xff]   ;;  %s976_s16 = sshll.u32 %s269_s6, 4  ;;  %s963_s10 = scalar_lea.sflag [#allocation4], %s1738_s12  ;;  %s1785_s16 = int_to_ptr.vmem [resolvable:$true] %s976_s16 }
  0x6d   : > { %1162 = vmatpush3.bf16.msra.mxu1 %v1319_v3  ;;  %v1327_v11 = vld [vmem:[#allocation5 + $0x90] sm:$0xff]   ;;  %v1328_v12 = vld [vmem:[#allocation5 + $0x58] sm:$0xff]   ;;  %v1332_v16 = vld [vmem:[#allocation5 + $0x60] sm:$0xff]   ;;  %s1459_s22 = scalar_lea.vmem %s1785_s16, 128  ;;  %p1846_p0 = scmp.ne.s32.totalorder %s1841_s23, 0 }
  0x6e   : > { %1163 = vmatprep.subr.bf16.mxu1 %v1322_v6  ;;  %v1329_v13 = vld [vmem:[#allocation5 + $0x18] sm:$0xff]   ;;  %v1333_v17 = vld [vmem:[#allocation5 + $0x20] sm:$0xff]   ;;  %v1336_v20 = vld [vmem:[#allocation5 + $0x68] sm:$0xff]   ;;  %p1460_p11 = scmp.ne.s32.totalorder %s1785_s16, %s1459_s22  ;;  %s1538_s13 = smov [#allocation8]  }
  0x6f   : > { %1142 = vmatpush3.bf16.msra.mxu0 %v1321_v5  ;;  %v1330_v14 = vld [vmem:[#allocation5 + $0xd8] sm:$0xff]   ;;  %v1334_v18 = vld [vmem:[#allocation5 + $0xe0] sm:$0xff]   ;;  %v1337_v21 = vld [vmem:[#allocation5 + $0x28] sm:$0xff]   ;;  %s1463_s29 = sshll.u32 %s1538_s13, 4  ;;  %s1464_s29 = int_to_ptr.vmem [resolvable:$false] %s1463_s29 }
  0x70   : > { %1143 = vmatprep.subr.bf16.mxu0 %v1324_v8  ;;  %v1331_v15 = vld [vmem:[#allocation5 + $0x98] sm:$0xff]   ;;  %v1335_v19 = vld [vmem:[#allocation5 + $0xa0] sm:$0xff]   ;;  %v1338_v22 = vld [vmem:[#allocation5 + $0xe8] sm:$0xff]   ;;  %p1461_p1 = pnand %p1460_p11, %p1846_p0  ;;  %p1466_p7 = scmp.lt.s32.totalorder %s1785_s16, %s1464_s29 }
  0x71   : > { %1164 = vmatpush3.bf16.msra.mxu1 %v1323_v7  ;;  %v1339_v23 = vld [vmem:[#allocation5 + $0xa8] sm:$0xff]   ;;  %v1340_v24 = vld [vmem:[#allocation5 + $0x70] sm:$0xff]   ;;  %v1344_v28 = vld [vmem:[#allocation5 + $0x78] sm:$0xff]  }
  0x72   : > { %1165 = vmatprep.subr.bf16.mxu1 %v1326_v10  ;;  %v1341_v25 = vld [vmem:[#allocation5 + $0x30] sm:$0xff]   ;;  %v1345_v29 = vld [vmem:[#allocation5 + $0x38] sm:$0xff]   ;;  %v1348_v36 = vld [vmem:[#allocation5 + $0x140] sm:$0xff]   ;;  %p1462_p3 = pneg %p1461_p1 }
  0x73   : > { %1144 = vmatpush3.bf16.msra.mxu0 %v1325_v9  ;;  %v1342_v26 = vld [vmem:[#allocation5 + $0xf0] sm:$0xff]   ;;  %v1346_v30 = vld [vmem:[#allocation5 + $0xf8] sm:$0xff]   ;;  %v274_v37 = vld [vmem:[%s1742_s17 + $0x18] sm:$0xff] }
  0x74   : > { %1145 = vmatprep.subr.bf16.mxu0 %v1328_v12  ;;  %v1343_v27 = vld [vmem:[#allocation5 + $0xb0] sm:$0xff]   ;;  %v1347_v33 = vld [vmem:[#allocation5 + $0xb8] sm:$0xff]   ;;  %v281_v38 = vpack.c.bf16 %v274_v37, %v274_v37  ;;  %v1349_v39 = vld [vmem:[#allocation5 + $0x100] sm:$0xff]  }
  0x75   : > { %1166 = vmatpush3.bf16.msra.mxu1 %v1327_v11  ;;  %v272_v31 = vld [vmem:[%s1742_s17 + $0x8] sm:$0xff]  ;;  %v271_v34 = vld [vmem:[%s1742_s17] sm:$0xff]  ;;  %v273_v40 = vld [vmem:[%s1742_s17 + $0x10] sm:$0xff] }
  0x76   : > { %1167 = vmatprep.subr.bf16.mxu1 %v1330_v14  ;;  %v279_v32 = vpack.c.bf16 %v272_v31, %v272_v31  ;;  %v278_v35 = vpack.c.bf16 %v271_v34, %v271_v34  ;;  %760 = vmatprep.mubr.bf16.mxu1 %v281_v38  ;;  %v280_v41 = vpack.c.bf16 %v273_v40, %v273_v40  ;;  %v1350_v42 = vld [vmem:[#allocation5 + $0x148] sm:$0xff]   ;;  %v1352_v45 = vld [vmem:[#allocation5 + $0x150] sm:$0xff]   ;;  %v1354_v47 = vld [vmem:[#allocation5 + $0x158] sm:$0xff]  }
  0x77   : > { %1146 = vmatpush3.bf16.msra.mxu0 %v1329_v13  ;;  %v1351_v43 = vld [vmem:[#allocation5 + $0x108] sm:$0xff]   ;;  %v1353_v46 = vld [vmem:[#allocation5 + $0x110] sm:$0xff]   ;;  %v1355_v48 = vld [vmem:[#allocation5 + $0x118] sm:$0xff]  }
  0x78   : > { %1147 = vmatprep.subr.bf16.mxu0 %v1332_v16  ;;  %720 = vmatprep.mubr.bf16.mxu0 %v279_v32  ;;  %v1356_v49 = vld [vmem:[#allocation5 + $0x160] sm:$0xff]   ;;  %v1358_v51 = vld [vmem:[#allocation5 + $0x168] sm:$0xff]   ;;  %v276_v54 = vld [vmem:[%s1742_s17 + $0x28] sm:$0xff] }
  0x79   : > { %1168 = vmatpush3.bf16.msra.mxu1 %v1331_v15  ;;  %v1357_v50 = vld [vmem:[#allocation5 + $0x120] sm:$0xff]   ;;  %v1359_v52 = vld [vmem:[#allocation5 + $0x128] sm:$0xff]   ;;  %v1360_v55 = vld [vmem:[#allocation5 + $0x170] sm:$0xff]   ;;  %v283_v56 = vpack.c.bf16 %v276_v54, %v276_v54 }
  0x7a   : > { %1169 = vmatprep.subr.bf16.mxu1 %v1334_v18  ;;  %v1364_v53 = vld [vmem:[#allocation5 + $0x180] sm:$0xff]   ;;  %v1361_v59 = vld [vmem:[#allocation5 + $0x130] sm:$0xff]   ;;  %v1362_v60 = vld [vmem:[#allocation5 + $0x178] sm:$0xff]  }
  0x7b   : > { %1148 = vmatpush3.bf16.msra.mxu0 %v1333_v17  ;;  %v277_v57 = vld [vmem:[%s1742_s17 + $0x30] sm:$0xff]  ;;  %v275_v62 = vld [vmem:[%s1742_s17 + $0x20] sm:$0xff]  ;;  %s1465_s17 = scalar_lea.vmem %s1464_s29, 256 }
  0x7c   : > { %1149 = vmatprep.subr.bf16.mxu0 %v1336_v20  ;;  %v284_v58 = vpack.c.bf16 %v277_v57, %v277_v57  ;;  %v1363_v61 = vld [vmem:[#allocation5 + $0x138] sm:$0xff]   ;;  %v282_v63 = vpack.c.bf16 %v275_v62, %v275_v62  ;;  %v1365_v0 = vld [vmem:[#allocation7] sm:$0xff]   ;;  %v1366_v1 = vld [vmem:[#allocation7 + $0x8] sm:$0xff]   ;;  %p1467_p9 = scmp.lt.s32.totalorder %s1465_s17, %s1459_s22 }
  0x7d   : > { %1170 = vmatpush3.bf16.msra.mxu1 %v1335_v19  ;;  %v1367_v2 = vld [vmem:[#allocation7 + $0x10] sm:$0xff]   ;;  %v1368_v3 = vld [vmem:[#allocation7 + $0x18] sm:$0xff]   ;;  %v1369_v4 = vld [vmem:[#allocation7 + $0x20] sm:$0xff]  }
  0x7e   : > { %1171 = vmatprep.subr.bf16.mxu1 %v1338_v22  ;;  %v1370_v5 = vld [vmem:[#allocation7 + $0x28] sm:$0xff]   ;;  %v1371_v6 = vld [vmem:[#allocation7 + $0x30] sm:$0xff]   ;;  %v1372_v7 = vld [vmem:[#allocation7 + $0x38] sm:$0xff]   ;;  %p1468_p12 = por %p1467_p9, %p1466_p7 }
  0x7f   : > { %1150 = vmatpush3.bf16.msra.mxu0 %v1337_v21  ;;  %v1075_v9 = vld [vmem:[%s1829_s2] ss:$0 sm:$0xff] }
  0x80   : > { %1151 = vmatprep.subr.bf16.mxu0 %v1340_v24  ;;  %v1126_v34 = vld [vmem:[%s1831_s4] ss:$0 sm:$0xff]  ;;  %p1469_p2 = pnand %p1468_p12, %p1462_p3 }
  0x81   : > { %1172 = vmatpush3.bf16.msra.mxu1 %v1339_v23 }
  0x82   : > { %1173 = vmatprep.subr.bf16.mxu1 %v1342_v26 }
  0x83   : > { %1152 = vmatpush3.bf16.msra.mxu0 %v1341_v25 }
  0x84   : > { %1153 = vmatprep.subr.bf16.mxu0 %v1344_v28 }
  0x85   : > { %1174 = vmatpush3.bf16.msra.mxu1 %v1343_v27 }
  0x86   : > { %1175 = vmatprep.subr.bf16.mxu1 %v1346_v30 }
  0x87   : > { %1154 = vmatpush3.bf16.msra.mxu0 %v1345_v29 }
  0x88   : > { %1183 = vmatprep.subr.bf16.mxu0 %v1348_v36 }
  0x89   : > { %1176 = vmatpush3.bf16.msra.mxu1 %v1347_v33 }
  0x8a   : > { %721 = vmatmul.mubr.bf16.vlgmr.msra.gmra.mrb[0].mxu0 %v278_v35  ;;  %1216 = vmatprep.subr.bf16.mxu1 %v1536_v44 }
  0x8b   : > { %1184 = vmatpush3.bf16.msra.mxu0 %v1349_v39  ;;  %800 = vmatprep.mubr.bf16.mxu0 %v283_v56 }
  0x8c   : > { %761 = vmatmul.mubr.bf16.vlgmr.msra.gmra.mrb[0].mxu1 %v280_v41  ;;  %1185 = vmatprep.subr.bf16.mxu0 %v1350_v42 }
  0x8d   : > { %1218 = vmatprep.mubr.msk.bf16.mxu1 %vm1537_vm0, %v1536_v44  ;;  %1217 = vmatpush3.bf16.msra.mxu1 %v1364_v53 }
  0x8e   : > { %1222 = vmatprep.subr.bf16.mxu1 %v1536_v44 }
  0x8f   : > { %1186 = vmatpush3.bf16.msra.mxu0 %v1351_v43 }
  0x90   : > { %1187 = vmatprep.subr.bf16.mxu0 %v1352_v45 }
  0x93   : > { %1188 = vmatpush3.bf16.msra.mxu0 %v1353_v46 }
  0x94   : > { %1189 = vmatprep.subr.bf16.mxu0 %v1354_v47  ;;  %1219 = vmatmul.mubr.msk.bf16.vlgmr.msra.gmra.mrb[4].mxu1 %vm684_vm1, %v284_v58 }
  0x95   : > { %1238 = vmatprep.mubr.msk.bf16.mxu1 %vm1537_vm0, %v1536_v44  ;;  %1223 = vmatpush3.bf16.msra.mxu1 %v1365_v0 }
  0x96   : > { %1224 = vmatprep.subr.bf16.mxu1 %v1536_v44 }
  0x97   : > { %1190 = vmatpush3.bf16.msra.mxu0 %v1355_v48 }
  0x98   : > { %1191 = vmatprep.subr.bf16.mxu0 %v1356_v49 }
  0x99   : > { %1225 = vmatpush3.bf16.msra.mxu1 %v1366_v1 }
  0x9a   : > { %1226 = vmatprep.subr.bf16.mxu1 %v1536_v44 }
  0x9b   : > { %1192 = vmatpush3.bf16.msra.mxu0 %v1357_v50 }
  0x9c   : > { %1193 = vmatprep.subr.bf16.mxu0 %v1358_v51 }
  0x9d   : > { %1227 = vmatpush3.bf16.msra.mxu1 %v1367_v2 }
  0x9e   : > { %1228 = vmatprep.subr.bf16.mxu1 %v1536_v44 }
  0x9f   : > { %1194 = vmatpush3.bf16.msra.mxu0 %v1359_v52 }
  0xa0   : > { %1195 = vmatprep.subr.bf16.mxu0 %v1360_v55 }
  0xa1   : > { %1229 = vmatpush3.bf16.msra.mxu1 %v1368_v3 }
  0xa2   : > { %1230 = vmatprep.subr.bf16.mxu1 %v1536_v44 }
  0xa3   : > { %1196 = vmatpush3.bf16.msra.mxu0 %v1361_v59 }
  0xa4   : > { %1197 = vmatprep.subr.bf16.mxu0 %v1362_v60 }
  0xa5   : > { %1231 = vmatpush3.bf16.msra.mxu1 %v1369_v4 }
  0xa6   : > { %1232 = vmatprep.subr.bf16.mxu1 %v1536_v44 }
  0xa7   : > { %1198 = vmatpush3.bf16.msra.mxu0 %v1363_v61 }
  0xa9   : > { %1233 = vmatpush3.bf16.msra.mxu1 %v1370_v5 }
  0xaa   : > { %801 = vmatmul.mubr.bf16.vlgmr.msra.gmra.mrb[4].mxu0 %v282_v63  ;;  %1234 = vmatprep.subr.bf16.mxu1 %v1536_v44 }
  0xad   : > { %1235 = vmatpush3.bf16.msra.mxu1 %v1371_v6 }
  0xae   : > { %1236 = vmatprep.subr.bf16.mxu1 %v1536_v44 }
  0xb1   : > { %1237 = vmatpush3.bf16.msra.mxu1 %v1372_v7 }
 0x15d   : > { %v1155_v8 = vpop.f32.mrb[0].mxu0 }
 0x15e   : > { %v1156_v10 = vpop.f32.mrb[1].mxu0 }
 0x15f   : > { %v1157_v11 = vadd.f32 %v1156_v10, %v1155_v8  ;;  %v1158_v12 = vpop.f32.mrb[2].mxu0  ;;  %v1177_v13 = vpop.f32.mrb[0].mxu1 }
 0x160   : > { %v1159_v14 = vpop.f32.mrb[3].mxu0  ;;  %v1178_v16 = vpop.f32.mrb[1].mxu1 }
 0x161   : > { %v723_v15 = vadd.f32 %v1157_v11, %v1075_v9  ;;  %v1179_v17 = vadd.f32 %v1178_v16, %v1177_v13  ;;  %v1180_v18 = vpop.f32.mrb[2].mxu1 }
 0x162   : > { %v1181_v19 = vpop.f32.mrb[3].mxu1 }
 0x163   : > { %v763_v20 = vadd.f32 %v1179_v17, %v723_v15 }
 0x167   : > { %v842_v21 = vpop.f32.mrb[4].mxu1 }
 0x168   : > { %v1220_v22 = vpop.f32.mrb[5].mxu1 }
 0x169   : > { %v845_v23 = vpop.f32.mrb[6].mxu1 }
 0x16a   : > { %v1221_v24 = vpop.f32.mrb[7].mxu1 }
 0x17d   : > { %v1199_v25 = vpop.f32.mrb[4].mxu0 }
 0x17e   : > { %v1200_v26 = vpop.f32.mrb[5].mxu0 }
 0x17f   : > { %v1201_v27 = vadd.f32 %v1200_v26, %v1199_v25  ;;  %v1202_v28 = vpop.f32.mrb[6].mxu0 }
 0x180   : > { %v1203_v29 = vpop.f32.mrb[7].mxu0 }
 0x181   : > { %v803_v30 = vadd.f32 %v1201_v27, %v763_v20 }
 0x183   : > { %v843_v31 = vadd.f32 %v842_v21, %v803_v30 }
 0x185   : > { %v848_v32 = vmax.f32 %v843_v31, 0.0 }
 0x187   : > { %v849_v33 = vpack.c.bf16 %v848_v32, %v848_v32 }
 0x189   : > { %1239 = vmatmul.mubr.bf16.vlgmr.msra.gmra.mrb[8].mxu1 %v849_v33 }
 0x25c   : > { %v955_v35 = vpop.f32.mrb[8].mxu1 }
 0x25d   : > { %v956_v36 = vadd.f32 %v1126_v34, %v955_v35  ;;  %v1240_v37 = vpop.f32.mrb[9].mxu1 }
 0x25e   : > { %v958_v38 = vpop.f32.mrb[10].mxu1 }
 0x25f   : > { %961 = vst [vmem:[%s269_s6] sm:$0xff] %v956_v36  ;;  %v1241_v39 = vpop.f32.mrb[11].mxu1 }
 0x260   : > { %1472 = shalt.err (!%p1469_p2)
}
 0x261   : > { %s1473_s12 = scalar_lea.hbm %s1783_s8, 128  ;;  %s1477_s15 = scalar_lea.hbm %s1832_s5, 256 }
 0x262   : > { %p1474_p13 = scmp.ne.s32.totalorder %s1783_s8, %s1473_s12  ;;  %p1478_p4 = scmp.lt.u32.totalorder %s1783_s8, %s1832_s5 }
 0x263   : > { %p1479_p5 = scmp.lt.u32.totalorder %s1477_s15, %s1473_s12  ;;  %p1481_p11 = scmp.lt.u32.totalorder %s1473_s12, %s1783_s8 }
 0x264   : > { %p1475_p6 = pnand %p1474_p13, %p1846_p0 }
 0x265   : > { %p1480_p8 = por %p1479_p5, %p1478_p4 }
 0x266   : > { %p1476_p10 = pneg %p1475_p6 }
 0x267   : > { %p1482_p1 = por %p1481_p11, %p1480_p8 }
 0x269   : > { %p1483_p3 = pnand %p1482_p1, %p1476_p10 }
 0x26b   : > { %1486 = shalt.err (!%p1483_p3)
}
 0x26c   : > { %1255 = dma.vmem_to_hbm [thread:$0]  (%p1846_p0), %s1785_s16, 128, %s1783_s8, %s963_s10  }
 0x26d PF: > { %s988_s28 = sand.u32 1, %s1517_s18   ;;  %p1847_p7 = scmp.ne.s32.totalorder %s1837_s25, 0 }
 0x26e   : > { %p1848_p9 = scmp.ge.s32.totalorder %s1529_s21, 2  ;;  %s989_s6 = scalar_lea.sflag [#allocation4], %s988_s28 }
 0x270   : > { %p1269_p12 = pnand %p1848_p9, %p1847_p7 }
 0x272   : > { %1512 = dma.done.wait (!%p1269_p12), %s989_s6, 128  }
 0x273   : > { %1514 = vsyncadd (!%p1269_p12), %s989_s6, 4294967168  ;;  %p19_p2 = scmp.ge.s32.totalorder %s1679_s14, 4   ;;  %s1849_s18 = smov %s1521_s19 }
 0x274   : > { %s1850_s19 = smov %s1525_s20  ;;  %s1851_s20 = smov %s1695_s27 }
 0x275   : > { %s1852_s21 = smov %s1679_s14  ;;  %21 = sbr.rel (!%p19_p2) target bundleno = 6 (0x6), region = 93 }
 0x27c   :  { %994 = vsyncpa [#allocation3], 1 }
 0x27d   :  { %996 = vsyncpa [#allocation3 + $0x1], 1 }
 0x27e   :  { %997 = vsyncpa [#allocation6], 1 }
 0x27f   :  { %998 = vsyncpa [#allocation4], 1 }
 0x280   :  { %1000 = vsyncpa [#allocation4 + $0x1], 1 }

</bundles_post_ra>
